<compile_context>
chip_gen: v6e
topology: v6e:2x2x1
jax: 0.10.0
libtpu: 0.0.40
codegen_flags: <defaults>
</compile_context>

<pallas_src>
import functools

import jax
import jax.numpy as jnp
from jax.experimental import pallas as pl
from jax.experimental.pallas import tpu as pltpu

LANE = 128               # lane padding target (use 256 on v6e/v7x at realistic H/O)
SUBLANE_BF16 = 16        # bf16 vregs pack (16, 128): pad batch to 16 sublanes
VMEM_LIMIT_BYTES = 32 * 1024 * 1024   # explicit scoped-VMEM limit (safe v5e..v7x)


def _round_up(x, m):
    return (x + m - 1) // m * m


def _pad_to(x, shape):
    return jnp.pad(x, [(0, t - s) for s, t in zip(x.shape, shape)])


def _masked_bias(b, out_size, padded_size):
    """f32 bias row whose padded lanes are -1e30 so they vanish from softmax.
    Must stay f32 (never bake -1e30 into a bf16 tensor)."""
    row = jnp.full((1, padded_size), -1e30, jnp.float32)
    return row.at[0, :out_size].set(b.astype(jnp.float32))


# ---------------------------------------------------------------------------
# Kernel 1: single RNN step (== RNN.forward), padded + lane-dense.
# ---------------------------------------------------------------------------
def _rnn_step_kernel(xcat_ref, wcat_ref, bi_ref, wo_ref, bo_ref, hid_ref, lp_ref):
    # hidden = i2h(cat(data, h)) as ONE (Bp,Kp)x(Kp,Hp) MXU matmul (bf16 in, f32 acc)
    hidden = (jnp.dot(xcat_ref[...], wcat_ref[...],
                      preferred_element_type=jnp.float32) + bi_ref[...])
    hid_ref[...] = hidden.astype(hid_ref.dtype)

    # output = h2o(hidden); padded lanes carry bo = -1e30 -> drop out of softmax
    logits = (jnp.dot(hidden.astype(wo_ref.dtype), wo_ref[...],
                      preferred_element_type=jnp.float32) + bo_ref[...])
    m = jnp.max(logits, axis=1, keepdims=True)
    shifted = logits - m
    lse = jnp.log(jnp.sum(jnp.exp(shifted), axis=1, keepdims=True))
    lp_ref[...] = (shifted - lse).astype(lp_ref.dtype)


def rnn_forward(data, last_hidden, w_i2h, b_i2h, w_h2o, b_h2o,
                *, mxu_dtype=jnp.bfloat16, lane=LANE):
    """One RNN cell step.  data: (B,D), last_hidden: (B,H).
    w_i2h: (H, D+H) torch (out,in) layout; w_h2o: (O, H).
    Returns (hidden (B,H) f32, log_probs (B,O) f32)."""
    B, D = data.shape
    H = last_hidden.shape[1]
    O = w_h2o.shape[0]
    K = D + H

    Bp = _round_up(max(B, SUBLANE_BF16), SUBLANE_BF16)
    Kp = _round_up(K, lane)
    Hp = _round_up(H, lane)
    Op = _round_up(O, lane)

    # layout plumbing (wrapper-side): concat + zero-pad to lane/sublane-dense tiles
    x_cat = jnp.concatenate([data, last_hidden], axis=1)            # (B, K)
    x_cat = _pad_to(x_cat, (Bp, Kp)).astype(mxu_dtype)
    w_cat = _pad_to(w_i2h.T, (Kp, Hp)).astype(mxu_dtype)            # (Kp, Hp)
    bi = _pad_to(b_i2h.reshape(1, H), (1, Hp)).astype(jnp.float32)
    wo = _pad_to(w_h2o.T, (Hp, Op)).astype(mxu_dtype)               # (Hp, Op)
    bo = _masked_bias(b_h2o, O, Op)                                 # -1e30 pad lanes

    full = lambda shape: pl.BlockSpec(shape, lambda: tuple(0 for _ in shape))

    hidden_p, logprob_p = pl.pallas_call(
        _rnn_step_kernel,
        out_shape=(
            jax.ShapeDtypeStruct((Bp, Hp), jnp.float32),
            jax.ShapeDtypeStruct((Bp, Op), jnp.float32),
        ),
        grid=(),
        in_specs=[full((Bp, Kp)), full((Kp, Hp)), full((1, Hp)),
                  full((Hp, Op)), full((1, Op))],
        out_specs=(full((Bp, Hp)), full((Bp, Op))),
        compiler_params=pltpu.CompilerParams(vmem_limit_bytes=VMEM_LIMIT_BYTES),
    )(x_cat, w_cat, bi, wo, bo)

    return hidden_p[:B, :H], logprob_p[:B, :O]


# ---------------------------------------------------------------------------
# Kernel 2a: hoisted input projection  xproj = X @ Wd + bi, all timesteps,
#            parallel grid over time chunks, bf16 output.
# ---------------------------------------------------------------------------
def _proj_kernel(x_ref, wd_ref, bi_ref, o_ref):
    tc, bp, dp = x_ref.shape
    x2 = x_ref[...].reshape(tc * bp, dp)                  # merge (t, b) for the MXU
    y = jnp.dot(x2, wd_ref[...], preferred_element_type=jnp.float32) + bi_ref[...]
    o_ref[...] = y.reshape(tc, bp, -1).astype(o_ref.dtype)


# ---------------------------------------------------------------------------
# Kernel 2b: serial recurrence only.  grid=(batch_blocks, T//Tc), Wh resident,
#            hidden carried across time chunks in a VMEM scratch, Tc steps
#            unrolled inside each grid step.
# ---------------------------------------------------------------------------
def _rnn_seq_kernel(xproj_ref, h0_ref, wh_ref, hid_ref, h_carry, *, tc):
    @pl.when(pl.program_id(1) == 0)
    def _():
        h_carry[...] = h0_ref[...]

    wh = wh_ref[...]                                       # hoist the weight load

    def step(i, h):
        # only thing on the serial critical path: one (tb,Hp)x(Hp,Hp) matmul
        hidden = xproj_ref[i].astype(jnp.float32) + jnp.dot(
            h.astype(wh.dtype), wh, preferred_element_type=jnp.float32)
        hid_ref[i] = hidden.astype(hid_ref.dtype)
        return hidden

    h_carry[...] = jax.lax.fori_loop(0, tc, step, h_carry[...], unroll=True)


# ---------------------------------------------------------------------------
# Kernel 2c: hoisted output projection + log-softmax over ALL (t, b) rows.
# ---------------------------------------------------------------------------
def _h2o_logsoftmax_kernel(h_ref, wo_ref, bo_ref, lp_ref):
    tc, bp, hp = h_ref.shape
    h2 = h_ref[...].reshape(tc * bp, hp).astype(wo_ref.dtype)
    logits = jnp.dot(h2, wo_ref[...], preferred_element_type=jnp.float32) + bo_ref[...]
    m = jnp.max(logits, axis=1, keepdims=True)
    shifted = logits - m
    lse = jnp.log(jnp.sum(jnp.exp(shifted), axis=1, keepdims=True))
    lp_ref[...] = (shifted - lse).reshape(tc, bp, -1).astype(lp_ref.dtype)


def rnn_forward_seq(data_seq, h0, w_i2h, b_i2h, w_h2o, b_h2o,
                    *, mxu_dtype=jnp.bfloat16, lane=LANE,
                    time_chunk=8, batch_block=None):
    """Apply the RNN cell over a whole sequence.
    data_seq: (T, B, D), h0: (B, H).
    Returns (hidden_seq (T,B,H) f32, log_probs_seq (T,B,O) f32).
    Note: i2h accumulation is split (xproj stored bf16 + f32-acc h@Wh), so
    results differ from a pure-f32 RNN at the ~1e-2 level over long T."""
    T, B, D = data_seq.shape
    H = h0.shape[1]
    O = w_h2o.shape[0]

    Bp = _round_up(max(B, SUBLANE_BF16), SUBLANE_BF16)
    Dp = _round_up(D, lane)
    Hp = _round_up(H, lane)
    Op = _round_up(O, lane)

    tc = max(1, min(time_chunk, T))
    Tp = _round_up(T, tc)
    tb = Bp if batch_block is None else batch_block
    assert Bp % tb == 0, "batch_block must divide the padded batch"
    n_t = Tp // tc
    n_b = Bp // tb

    # torch (out,in) -> (in,out); split i2h weight into data / hidden parts
    w_i2h_t = w_i2h.T                                      # (D+H, H)
    wd = _pad_to(w_i2h_t[:D, :], (Dp, Hp)).astype(mxu_dtype)
    wh = _pad_to(w_i2h_t[D:, :], (Hp, Hp)).astype(mxu_dtype)
    wo = _pad_to(w_h2o.T, (Hp, Op)).astype(mxu_dtype)
    bi = _pad_to(b_i2h.reshape(1, H), (1, Hp)).astype(jnp.float32)
    bo = _masked_bias(b_h2o, O, Op)                        # -1e30 in padded lanes

    x = _pad_to(data_seq, (Tp, Bp, Dp)).astype(mxu_dtype)
    h0_p = _pad_to(h0, (Bp, Hp)).astype(jnp.float32)

    # ---- 1) hoisted, fully parallel input projection (bf16 output) ----------
    xproj = pl.pallas_call(
        _proj_kernel,
        out_shape=jax.ShapeDtypeStruct((Tp, Bp, Hp), mxu_dtype),
        grid=(n_t,),
        in_specs=[pl.BlockSpec((tc, Bp, Dp), lambda t: (t, 0, 0)),
                  pl.BlockSpec((Dp, Hp), lambda t: (0, 0)),
                  pl.BlockSpec((1, Hp), lambda t: (0, 0))],
        out_specs=pl.BlockSpec((tc, Bp, Hp), lambda t: (t, 0, 0)),
        compiler_params=pltpu.CompilerParams(
            dimension_semantics=("parallel",),
            vmem_limit_bytes=VMEM_LIMIT_BYTES),
    )(x, wd, bi)

    # ---- 2) serial recurrence: hidden[t] = xproj[t] + h @ Wh ----------------
    hid_seq_p = pl.pallas_call(
        functools.partial(_rnn_seq_kernel, tc=tc),
        out_shape=jax.ShapeDtypeStruct((Tp, Bp, Hp), jnp.float32),
        grid_spec=pltpu.PrefetchScalarGridSpec(
            num_scalar_prefetch=0,
            grid=(n_b, n_t),
            in_specs=[
                pl.BlockSpec((tc, tb, Hp), lambda b, t: (t, b, 0)),   # xproj chunk
                pl.BlockSpec((tb, Hp), lambda b, t: (b, 0)),          # h0
                pl.BlockSpec((Hp, Hp), lambda b, t: (0, 0)),          # Wh (resident)
            ],
            out_specs=pl.BlockSpec((tc, tb, Hp), lambda b, t: (t, b, 0)),
            scratch_shapes=[pltpu.VMEM((tb, Hp), jnp.float32)],       # h carry
        ),
        compiler_params=pltpu.CompilerParams(
            dimension_semantics=("parallel", "arbitrary"),
            vmem_limit_bytes=VMEM_LIMIT_BYTES),
    )(xproj, h0_p, wh)

    # ---- 3) hoisted output GEMM + log-softmax over all (t, b) rows ----------
    lp_seq_p = pl.pallas_call(
        _h2o_logsoftmax_kernel,
        out_shape=jax.ShapeDtypeStruct((Tp, Bp, Op), jnp.float32),
        grid=(n_t,),
        in_specs=[pl.BlockSpec((tc, Bp, Hp), lambda t: (t, 0, 0)),
                  pl.BlockSpec((Hp, Op), lambda t: (0, 0)),
                  pl.BlockSpec((1, Op), lambda t: (0, 0))],
        out_specs=pl.BlockSpec((tc, Bp, Op), lambda t: (t, 0, 0)),
        compiler_params=pltpu.CompilerParams(
            dimension_semantics=("parallel",),
            vmem_limit_bytes=VMEM_LIMIT_BYTES),
    )(hid_seq_p, wo, bo)

    return hid_seq_p[:T, :B, :H], lp_seq_p[:T, :B, :O]


def _torch_like_linear_init(key, out_features, in_features):
    """nn.Linear default init: U(-1/sqrt(fan_in), +1/sqrt(fan_in))."""
    kw, kb = jax.random.split(key)
    bound = 1.0 / (in_features ** 0.5)
    w = jax.random.uniform(kw, (out_features, in_features), jnp.float32,
                           minval=-bound, maxval=bound)
    b = jax.random.uniform(kb, (out_features,), jnp.float32,
                           minval=-bound, maxval=bound)
    return w, b


if __name__ == "__main__":
    key = jax.random.PRNGKey(0)

    batch = 2
    data_size = 16
    hidden_size = 32
    output_size = 8
    seq_len = 8
    input_size = data_size + hidden_size

    k_data, k_seq, k_i2h, k_h2o = jax.random.split(key, 4)
    data = jax.random.normal(k_data, (batch, data_size), jnp.float32)
    data_seq = jax.random.normal(k_seq, (seq_len, batch, data_size), jnp.float32)
    last_hidden = jnp.zeros((batch, hidden_size), jnp.float32)  # initHidden-style

    w_i2h, b_i2h = _torch_like_linear_init(k_i2h, hidden_size, input_size)
    w_h2o, b_h2o = _torch_like_linear_init(k_h2o, output_size, hidden_size)

    # ----- single step (== RNN.forward) -----
    hidden, log_probs = rnn_forward(data, last_hidden, w_i2h, b_i2h, w_h2o, b_h2o)
    jax.block_until_ready((hidden, log_probs))

    # Reference with the same bf16-operand / f32-accumulate matmul semantics.
    bf = jnp.bfloat16

    def ref_step(x, h):
        xc = jnp.concatenate([x, h], axis=1).astype(bf)
        hid = jnp.dot(xc, w_i2h.T.astype(bf),
                      preferred_element_type=jnp.float32) + b_i2h
        logits = jnp.dot(hid.astype(bf), w_h2o.T.astype(bf),
                         preferred_element_type=jnp.float32) + b_h2o
        return hid, jax.nn.log_softmax(logits, axis=1)

    hid_ref, lp_ref = ref_step(data, last_hidden)
    assert jnp.allclose(hidden, hid_ref, atol=2e-3, rtol=2e-3)
    assert jnp.allclose(log_probs, lp_ref, atol=2e-3, rtol=2e-3)

    # ----- fused sequence (hoisted proj / serial recurrence / hoisted h2o) -----
    hid_seq, lp_seq = rnn_forward_seq(data_seq, last_hidden,
                                      w_i2h, b_i2h, w_h2o, b_h2o)
    jax.block_until_ready((hid_seq, lp_seq))

    def scan_step(h, x):
        hid, lp = ref_step(x, h)
        return hid, (hid, lp)

    _, (hid_seq_ref, lp_seq_ref) = jax.lax.scan(scan_step, last_hidden, data_seq)
    # Looser tolerance: the seq path stores xproj in bf16 and splits the i2h
    # accumulation (documented numerics deviation vs. the single-dot reference).
    assert jnp.allclose(hid_seq, hid_seq_ref, atol=2e-2, rtol=2e-2)
    assert jnp.allclose(lp_seq, lp_seq_ref, atol=2e-2, rtol=2e-2)

    print("KERNEL_OK")
</pallas_src>

<mosaic_0001>
module attributes {stable_mosaic.version = 11 : i64} {
  func.func @_rnn_step_kernel(%arg0: memref<16x128xbf16, #tpu.memory_space<vmem>>, %arg1: memref<128x128xbf16, #tpu.memory_space<vmem>>, %arg2: memref<1x128xf32, #tpu.memory_space<vmem>>, %arg3: memref<128x128xbf16, #tpu.memory_space<vmem>>, %arg4: memref<1x128xf32, #tpu.memory_space<vmem>>, %arg5: memref<16x128xf32, #tpu.memory_space<vmem>>, %arg6: memref<16x128xf32, #tpu.memory_space<vmem>>) attributes {dimension_semantics = [], scalar_prefetch = 0 : i64, scratch_operands = 0 : i64, tpu.core_type = #tpu.core_type<tc>} {
    %c0 = arith.constant 0 : index
    %c0_0 = arith.constant 0 : index
    %0 = vector.load %arg0[%c0, %c0_0] : memref<16x128xbf16, #tpu.memory_space<vmem>>, vector<16x128xbf16>
    %c0_1 = arith.constant 0 : index
    %c0_2 = arith.constant 0 : index
    %1 = vector.load %arg1[%c0_1, %c0_2] : memref<128x128xbf16, #tpu.memory_space<vmem>>, vector<128x128xbf16>
    %cst = arith.constant dense<0.000000e+00> : vector<16x128xf32>
    %2 = tpu.matmul %0, %1, %cst {dimension_numbers = #tpu.dot_dimension_numbers<[1], [0], [0], [1], [0, 0, 1, 1], [], []>} : vector<16x128xbf16>, vector<128x128xbf16>, vector<16x128xf32> -> vector<16x128xf32>
    %c0_3 = arith.constant 0 : index
    %c0_4 = arith.constant 0 : index
    %3 = vector.load %arg2[%c0_3, %c0_4] : memref<1x128xf32, #tpu.memory_space<vmem>>, vector<1x128xf32>
    %4 = vector.broadcast %3 : vector<1x128xf32> to vector<16x128xf32>
    %5 = arith.addf %2, %4 : vector<16x128xf32>
    %c0_5 = arith.constant 0 : index
    %c0_6 = arith.constant 0 : index
    %6 = vector.load %arg5[%c0_5, %c0_6] : memref<16x128xf32, #tpu.memory_space<vmem>>, vector<16x128xf32>
    tpu.vector_store %arg5[%c0_5, %c0_6], %5 {strides = array<i32>} : memref<16x128xf32, #tpu.memory_space<vmem>>, vector<16x128xf32>,
    %7 = arith.truncf %5 : vector<16x128xf32> to vector<16x128xbf16>
    %c0_7 = arith.constant 0 : index
    %c0_8 = arith.constant 0 : index
    %8 = vector.load %arg3[%c0_7, %c0_8] : memref<128x128xbf16, #tpu.memory_space<vmem>>, vector<128x128xbf16>
    %cst_9 = arith.constant dense<0.000000e+00> : vector<16x128xf32>
    %9 = tpu.matmul %7, %8, %cst_9 {dimension_numbers = #tpu.dot_dimension_numbers<[1], [0], [0], [1], [0, 0, 1, 1], [], []>} : vector<16x128xbf16>, vector<128x128xbf16>, vector<16x128xf32> -> vector<16x128xf32>
    %c0_10 = arith.constant 0 : index
    %c0_11 = arith.constant 0 : index
    %10 = vector.load %arg4[%c0_10, %c0_11] : memref<1x128xf32, #tpu.memory_space<vmem>>, vector<1x128xf32>
    %11 = vector.broadcast %10 : vector<1x128xf32> to vector<16x128xf32>
    %12 = arith.addf %9, %11 : vector<16x128xf32>
    %cst_12 = arith.constant dense<0xFF800000> : vector<16xf32>
    %13 = vector.multi_reduction <maximumf>, %12, %cst_12 [1] : vector<16x128xf32> to vector<16xf32>
    %14 = vector.shape_cast %13 : vector<16xf32> to vector<16x1xf32>
    %15 = vector.broadcast %14 : vector<16x1xf32> to vector<16x128xf32>
    %16 = arith.subf %12, %15 : vector<16x128xf32>
    %17 = math.exp %16 : vector<16x128xf32>
    %cst_13 = arith.constant dense<0.000000e+00> : vector<16xf32>
    %18 = vector.multi_reduction <add>, %17, %cst_13 [1] : vector<16x128xf32> to vector<16xf32>
    %19 = vector.shape_cast %18 : vector<16xf32> to vector<16x1xf32>
    %20 = math.log %19 : vector<16x1xf32>
    %21 = vector.broadcast %20 : vector<16x1xf32> to vector<16x128xf32>
    %22 = arith.subf %16, %21 : vector<16x128xf32>
    %c0_14 = arith.constant 0 : index
    %c0_15 = arith.constant 0 : index
    %23 = vector.load %arg6[%c0_14, %c0_15] : memref<16x128xf32, #tpu.memory_space<vmem>>, vector<16x128xf32>
    tpu.vector_store %arg6[%c0_14, %c0_15], %22 {strides = array<i32>} : memref<16x128xf32, #tpu.memory_space<vmem>>, vector<16x128xf32>,
    return
  }
}

</mosaic_0001>

<bundles_post_ra>
// kernel: tpu_custom_call.1
= control target key start
LH: loop header
LB: loop body
LE: loop exit
PB: predicated region body
PF: predicated region fallthrough
CT: control target
= control target key end

     0   :  { %12 = vsyncpa [#allocation3], 0  ;;  %s645_s0 = inlined_call_operand.hbm [shape: bf16[16,128], index: 0, kind: input, shape index: {}]   ;;  %s646_s1 = inlined_call_operand.hbm [shape: bf16[128,128], index: 1, kind: input, shape index: {}]   ;;  %s647_s2 = inlined_call_operand.vmem [shape: f32[1,128], index: 2, kind: input, shape index: {}]   ;;  %s648_s3 = inlined_call_operand.hbm [shape: bf16[128,128], index: 3, kind: input, shape index: {}]   ;;  %s649_s4 = inlined_call_operand.vmem [shape: f32[1,128], index: 4, kind: input, shape index: {}]   ;;  %s650_s5 = inlined_call_operand.hbm [shape: f32[16,128], index: 5, kind: output, shape index: {0}]   ;;  %s651_s6 = inlined_call_operand.hbm [shape: f32[16,128], index: 6, kind: output, shape index: {1}]  }
   0x1   :  { %13 = vsyncpa [#allocation6], 0 }
   0x2   :  { %14 = vsyncpa [#allocation4], 0 }
   0x3   :  { %15 = vsyncpa [#allocation10], 0  ;;  %s578_s21 = smov [#allocation5]   ;;  %s579_s23 = smov [#allocation2]  }
   0x4   :  { %s33_s22 = sshll.u32 %s578_s21, 4  ;;  %s21_s24 = sshll.u32 %s579_s23, 4  ;;  %s34_s22 = int_to_ptr.vmem [resolvable:$true] %s33_s22  ;;  %s22_s24 = int_to_ptr.vmem [resolvable:$true] %s21_s24 }
   0x5   :  { %s478_s25 = scalar_lea.vmem %s34_s22, 1024  ;;  %p483_p1 = scmp.lt.s32.totalorder %s34_s22, %s34_s22 }
   0x6   :  { %p479_p0 = scmp.ne.s32.totalorder %s34_s22, %s478_s25  ;;  %p484_p2 = scmp.lt.s32.totalorder %s478_s25, %s478_s25 }
   0x8   :  { %p485_p3 = por %p484_p2, %p483_p1 }
   0xa   :  { %p486_p4 = pnand %p485_p3, %p479_p0 }
   0xc   :  { %489 = shalt.err (!%p486_p4)
}
   0xd   :  { %s580_s26 = smov 64   ;;  %s581_s27 = smov 4  }
   0xe   :  { %39 = dma.hbm_to_vmem [thread:$0]  %s646_s1, 1024, %s34_s22, [#allocation6], %s580_s26, %s580_s26, %s581_s27  }
   0xf   :  { %s498_s30 = scalar_lea.vmem %s22_s24, 128  ;;  %p503_p6 = scmp.lt.s32.totalorder %s22_s24, %s22_s24 }
  0x10   :  { %p499_p5 = scmp.ne.s32.totalorder %s22_s24, %s498_s30  ;;  %p504_p7 = scmp.lt.s32.totalorder %s498_s30, %s498_s30 }
  0x12   :  { %p505_p8 = por %p504_p7, %p503_p6 }
  0x14   :  { %p506_p9 = pnand %p505_p8, %p499_p5 }
  0x16   :  { %509 = shalt.err (!%p506_p9)
}
  0x17   :  { %27 = dma.hbm_to_vmem [thread:$0]  %s645_s0, 128, %s22_s24, [#allocation3], %s580_s26, %s580_s26, %s581_s27  }
  0x18   :  { %s582_s9 = smov [#allocation7]  }
  0x19   :  { %s47_s10 = sshll.u32 %s582_s9, 4  ;;  %s48_s10 = int_to_ptr.vmem [resolvable:$true] %s47_s10 }
  0x1a   :  { %s518_s11 = scalar_lea.vmem %s48_s10, 1024  ;;  %p523_p11 = scmp.lt.s32.totalorder %s48_s10, %s48_s10 }
  0x1b   :  { %p519_p10 = scmp.ne.s32.totalorder %s48_s10, %s518_s11  ;;  %p524_p12 = scmp.lt.s32.totalorder %s518_s11, %s518_s11 }
  0x1d   :  { %p525_p13 = por %p524_p12, %p523_p11 }
  0x1f   :  { %p526_p0 = pnand %p525_p13, %p519_p10 }
  0x21   :  { %529 = shalt.err (!%p526_p0)
}
  0x22   :  { %53 = dma.hbm_to_vmem [thread:$0]  %s648_s3, 1024, %s48_s10, [#allocation6], %s580_s26, %s580_s26, %s581_s27  }
  0x23   :  { %570 = dma.done.wait [#allocation3], 128  }
  0x24   :  { %571 = vsyncadd [#allocation3], 4294967168 }
  0x25   :  { %572 = dma.done.wait [#allocation6], 2048  }
  0x26   :  { %573 = vsyncadd [#allocation6], 4294965248  ;;  %v583_v0 = vmov 0.0   ;;  %vm584_vm0 = vmmov 0   ;;  %v445_v1 = vld [vmem:[#allocation5 + $0x38] sm:$0xff]   ;;  %v446_v2 = vld [vmem:[#allocation5 + $0x30] sm:$0xff]  }
  0x27   :  { %394 = vmatprep.subr.bf16.mxu0 %v583_v0  ;;  %410 = vmatprep.mubr.msk.bf16.mxu0 %vm584_vm0, %v583_v0  ;;  %v447_v3 = vld [vmem:[#allocation5 + $0x28] sm:$0xff]   ;;  %v454_v4 = vld [vmem:[#allocation7 + $0x38] sm:$0xff]   ;;  %v448_v5 = vld [vmem:[#allocation5 + $0x20] sm:$0xff]  }
  0x28   :  { %414 = vmatprep.subr.bf16.mxu1 %v583_v0  ;;  %430 = vmatprep.mubr.msk.bf16.mxu1 %vm584_vm0, %v583_v0  ;;  %v455_v6 = vld [vmem:[#allocation7 + $0x30] sm:$0xff]   ;;  %v449_v7 = vld [vmem:[#allocation5 + $0x18] sm:$0xff]   ;;  %v456_v8 = vld [vmem:[#allocation7 + $0x28] sm:$0xff]  }
  0x29   :  { %395 = vmatpush3.bf16.msra.mxu0 %v445_v1  ;;  %415 = vmatpush3.bf16.msra.mxu1 %v454_v4  ;;  %v450_v9 = vld [vmem:[#allocation5 + $0x10] sm:$0xff]   ;;  %v457_v10 = vld [vmem:[#allocation7 + $0x20] sm:$0xff]   ;;  %v451_v11 = vld [vmem:[#allocation5 + $0x8] sm:$0xff]  }
  0x2a   :  { %396 = vmatprep.subr.bf16.mxu0 %v583_v0  ;;  %416 = vmatprep.subr.bf16.mxu1 %v583_v0  ;;  %v458_v12 = vld [vmem:[#allocation7 + $0x18] sm:$0xff]   ;;  %v452_v13 = vld [vmem:[#allocation5] sm:$0xff]   ;;  %v459_v14 = vld [vmem:[#allocation7 + $0x10] sm:$0xff]  }
  0x2b   :  { %v453_v15 = vld [vmem:[#allocation2] sm:$0xff]   ;;  %v460_v16 = vld [vmem:[#allocation7 + $0x8] sm:$0xff]   ;;  %v461_v17 = vld [vmem:[#allocation7] sm:$0xff]  }
  0x2c   :  { %v357_v18 = vld [vmem:[%s647_s2] ss:$0 sm:$0xff]  ;;  %s585_s2 = smov [#allocation8]  }
  0x2d   :  { %397 = vmatpush3.bf16.msra.mxu0 %v446_v2  ;;  %417 = vmatpush3.bf16.msra.mxu1 %v455_v6  ;;  %v367_v26 = vld [vmem:[%s649_s4] ss:$0 sm:$0xff]  ;;  %s328_s4 = sshll.u32 %s585_s2, 4  ;;  %s329_s4 = int_to_ptr.vmem [resolvable:$true] %s328_s4 }
  0x2e   :  { %398 = vmatprep.subr.bf16.mxu0 %v583_v0  ;;  %418 = vmatprep.subr.bf16.mxu1 %v583_v0  ;;  %s530_s15 = scalar_lea.vmem %s329_s4, 256  ;;  %p535_p2 = scmp.lt.s32.totalorder %s329_s4, %s329_s4 }
  0x2f   :  { %p531_p1 = scmp.ne.s32.totalorder %s329_s4, %s530_s15  ;;  %p536_p3 = scmp.lt.s32.totalorder %s530_s15, %s530_s15 }
  0x31   :  { %399 = vmatpush3.bf16.msra.mxu0 %v447_v3  ;;  %419 = vmatpush3.bf16.msra.mxu1 %v456_v8  ;;  %p537_p4 = por %p536_p3, %p535_p2 }
  0x32   :  { %400 = vmatprep.subr.bf16.mxu0 %v583_v0  ;;  %420 = vmatprep.subr.bf16.mxu1 %v583_v0 }
  0x33   :  { %p538_p5 = pnand %p537_p4, %p531_p1 }
  0x35   :  { %401 = vmatpush3.bf16.msra.mxu0 %v448_v5  ;;  %421 = vmatpush3.bf16.msra.mxu1 %v457_v10 }
  0x36   :  { %402 = vmatprep.subr.bf16.mxu0 %v583_v0  ;;  %422 = vmatprep.subr.bf16.mxu1 %v583_v0 }
  0x39   :  { %403 = vmatpush3.bf16.msra.mxu0 %v449_v7  ;;  %423 = vmatpush3.bf16.msra.mxu1 %v458_v12 }
  0x3a   :  { %404 = vmatprep.subr.bf16.mxu0 %v583_v0  ;;  %424 = vmatprep.subr.bf16.mxu1 %v583_v0 }
  0x3d   :  { %405 = vmatpush3.bf16.msra.mxu0 %v450_v9  ;;  %425 = vmatpush3.bf16.msra.mxu1 %v459_v14 }
  0x3e   :  { %406 = vmatprep.subr.bf16.mxu0 %v583_v0  ;;  %426 = vmatprep.subr.bf16.mxu1 %v583_v0 }
  0x41   :  { %407 = vmatpush3.bf16.msra.mxu0 %v451_v11  ;;  %427 = vmatpush3.bf16.msra.mxu1 %v460_v16 }
  0x42   :  { %408 = vmatprep.subr.bf16.mxu0 %v583_v0  ;;  %428 = vmatprep.subr.bf16.mxu1 %v583_v0 }
  0x45   :  { %409 = vmatpush3.bf16.msra.mxu0 %v452_v13  ;;  %429 = vmatpush3.bf16.msra.mxu1 %v461_v17 }
  0x48   :  { %411 = vmatmul.mubr.bf16.vlgmr.msra.gmra.mxu0 %v453_v15 }
 0x108   :  { %v179_v19 = vpop.f32.mrf.mxu0 }
 0x109   :  { %v180_v20 = vadd.f32 %v357_v18, %v179_v19 }
 0x10a   :  { %v412_v21 = vpop.f32.mrf.mxu0 }
 0x10b   :  { %186 = vst [vmem:[#allocation8] sm:$0xff] %v180_v20 }
 0x10c   :  { %v182_v22 = vpop.f32.mrf.mxu0 }
 0x10d   :  { %v183_v23 = vadd.f32 %v357_v18, %v182_v22 }
 0x10e   :  { %v413_v24 = vpop.f32.mrf.mxu0 }
 0x10f   :  { %187 = vst [vmem:[#allocation8 + $0x8] sm:$0xff] %v183_v23  ;;  %v188_v25 = vpack.c.bf16 %v183_v23, %v180_v20 }
 0x111   :  { %431 = vmatmul.mubr.bf16.vlgmr.msra.gmra.mxu1 %v188_v25 }
 0x1d1   :  { %v294_v27 = vpop.f32.mrf.mxu1 }
 0x1d2   :  { %v295_v28 = vadd.f32 %v367_v26, %v294_v27 }
 0x1d3   :  { %v432_v29 = vpop.f32.mrf.mxu1 }
 0x1d4   :  { %301 = vmax.xlane.f32.xlu0 %v295_v28 }
 0x1d5   :  { %v297_v30 = vpop.f32.mrf.mxu1 }
 0x1d6   :  { %v298_v31 = vadd.f32 %v367_v26, %v297_v30 }
 0x1d7   :  { %v433_v32 = vpop.f32.mrf.mxu1 }
 0x1d8   :  { %303 = vmax.xlane.f32.xlu0 %v298_v31 }
 0x25d   :  { %v302_v33 = vpop.xlane.xlu0 %301 }
 0x25e   :  { %v305_v34 = vsub.f32 %v295_v28, %v302_v33 }
 0x260   :  { %v307_v35 = vmul.f32 1.442695, %v305_v34 }
 0x261   :  { %v304_v36 = vpop.xlane.xlu0 %303 }
 0x262   :  { %v306_v37 = vsub.f32 %v298_v31, %v304_v36  ;;  %462 = vpow2.f32 %v307_v35 }
 0x264   :  { %v309_v38 = vmul.f32 1.442695, %v306_v37 }
 0x266   :  { %464 = vpow2.f32 %v309_v38 }
 0x26f   :  { %v463_v39 = vpop.eup %462 }
 0x270   :  { %311 = vadd.xlane.f32.xlu1 %v463_v39 }
 0x273   :  { %v465_v40 = vpop.eup %464 }
 0x274   :  { %313 = vadd.xlane.f32.xlu1 %v465_v40 }
 0x275   :  { %541 = shalt.err (!%p538_p5)
}
 0x276   :  { %s586_s16 = smov 128   ;;  %s587_s17 = smov 8  }
 0x277   :  { %334 = dma.vmem_to_hbm [thread:$0]  %s329_s4, 256, %s650_s5, [#allocation4], %s586_s16, %s586_s16, %s587_s17  }
 0x278   :  { %s588_s20 = smov [#allocation9]  }
 0x279   :  { %s340_s21 = sshll.u32 %s588_s20, 4  ;;  %s341_s21 = int_to_ptr.vmem [resolvable:$true] %s340_s21 }
 0x27a   :  { %s550_s22 = scalar_lea.vmem %s341_s21, 256  ;;  %p555_p7 = scmp.lt.s32.totalorder %s341_s21, %s341_s21 }
 0x27b   :  { %p551_p6 = scmp.ne.s32.totalorder %s341_s21, %s550_s22  ;;  %p556_p8 = scmp.lt.s32.totalorder %s550_s22, %s550_s22 }
 0x27d   :  { %p557_p9 = por %p556_p8, %p555_p7 }
 0x27f   :  { %p558_p10 = pnand %p557_p9, %p551_p6 }
 0x2f9   :  { %v312_v41 = vpop.xlane.xlu1 %311 }
 0x2fa   :  { %466 = vlog2.f32 %v312_v41 }
 0x2fd   :  { %v314_v42 = vpop.xlane.xlu1 %313 }
 0x2fe   :  { %468 = vlog2.f32 %v314_v42 }
 0x307   :  { %v467_v43 = vpop.eup %466 }
 0x308   :  { %v316_v44 = vmul.f32 0.6931472, %v467_v43 }
 0x30a   :  { %v319_v45 = vsub.f32 %v305_v34, %v316_v44 }
 0x30b   :  { %v469_v46 = vpop.eup %468 }
 0x30c   :  { %321 = vst [vmem:[#allocation9] sm:$0xff] %v319_v45  ;;  %v318_v47 = vmul.f32 0.6931472, %v469_v46 }
 0x30e   :  { %v320_v48 = vsub.f32 %v306_v37, %v318_v47 }
 0x310   :  { %322 = vst [vmem:[#allocation9 + $0x8] sm:$0xff] %v320_v48 }
 0x311   :  { %561 = shalt.err (!%p558_p10)
}
 0x312   :  { %346 = dma.vmem_to_hbm [thread:$0]  %s341_s21, 256, %s651_s6, [#allocation10], %s586_s16, %s586_s16, %s587_s17  }
 0x313   :  { %574 = dma.done.wait [#allocation4], 256  }
 0x314   :  { %575 = vsyncadd [#allocation4], 4294967040 }
 0x315   :  { %576 = dma.done.wait [#allocation10], 256  }
 0x316   :  { %577 = vsyncadd [#allocation10], 4294967040 }
 0x317   :  { %353 = vsyncpa [#allocation3], 1 }
 0x318   :  { %354 = vsyncpa [#allocation6], 1 }
 0x319   :  { %355 = vsyncpa [#allocation4], 1 }
 0x31a   :  { %356 = vsyncpa [#allocation10], 1 }

</bundles_post_ra>
